<compile_context>
chip_gen: v7x
topology: tpu7x:2x2x1
jax: 0.10.0
libtpu: 0.0.40
codegen_flags: <defaults>
</compile_context>

<pallas_src>
import functools

import jax
import jax.numpy as jnp
import numpy as np
from jax.experimental import pallas as pl
from jax.experimental.pallas import tpu as pltpu


def _round_up(x, m):
    return ((x + m - 1) // m) * m


def position_pooling_kernel(pos_ref,             # VMEM (Bt, 3) f32: [x, y, std]
                            fmap_ref,            # VMEM (Bt, C, HW) bf16 (streamed)
                            wsw1_ref, bsb1_ref,  # fused skip|lin1: (C, Cout_p+Hd), (1, Cout_p+Hd)
                            w2_ref, b2_ref,      # residual lin2:   (Hd, Cout_p),   (1, Cout_p)
                            out_ref,             # VMEM (Bt, Cout_p) f32
                            *, h, w, cout_p):
    hw = h * w
    pos = pos_ref[...]                           # (Bt, 3)
    px = pos[:, 0:1]
    py = pos[:, 1:2]
    std = pos[:, 2:3]

    # [-1, 1] coordinate grids generated in-kernel over the flattened (row-major)
    # spatial axis. row = s // w via float floor: exact while h*w stays modest
    # (h*w < ~1e6); switch to integer iota math for very large feature maps.
    s = jax.lax.broadcasted_iota(jnp.int32, (1, hw), 1).astype(jnp.float32)
    row = jnp.floor((s + 0.5) * (1.0 / w))       # s // w
    col = s - row * w                            # s %  w
    gy = row * (2.0 / max(h - 1, 1)) - 1.0       # (1, HW)
    gx = col * (2.0 / max(w - 1, 1)) - 1.0       # (1, HW)

    # Gaus2D mask, unnormalized; Bt rows fill the sublanes. Reciprocals go to the
    # EUP (approx vrcp) instead of VALU Newton divides. f32 throughout (v5e-safe).
    dx = gx - px                                 # (Bt, HW)
    dy = gy - py
    neg_inv_2var = -pl.reciprocal(2.0 * std * std + 1e-16, approx=True)    # (Bt, 1)
    mask = jnp.exp((dx * dx + dy * dy) * neg_inv_2var)                     # (Bt, HW)

    # Normalization hoisted off the HW-length vector onto the pooled result.
    inv_msum = pl.reciprocal(jnp.sum(mask, axis=-1, keepdims=True) + 1e-8,
                             approx=True)                                  # (Bt, 1)

    # pooled[b, c] = sum_s mask[b, s] * fmap[b, c, s]
    # fmap is streamed from HBM as bf16 (halves the dominant read traffic) and
    # upcast in-register; mask multiply + lane reduce stay f32.
    fm = fmap_ref[...].astype(jnp.float32)                                 # (Bt, C, HW)
    pooled = jnp.sum(mask[:, None, :] * fm, axis=-1)                       # (Bt, C)
    pooled = pooled * inv_msum

    # Fused (skip | residual-lin1) matmul: one MXU pass for the tiny-K GEMM.
    sh = jnp.dot(pooled, wsw1_ref[...],
                 preferred_element_type=jnp.float32) + bsb1_ref[...]       # (Bt, Cout_p+Hd)
    skip = sh[:, :cout_p]
    hmid = sh[:, cout_p:]
    hmid = hmid * jax.nn.sigmoid(hmid)                                     # SiLU
    res = jnp.dot(hmid, w2_ref[...],
                  preferred_element_type=jnp.float32) + b2_ref[...]

    # Lane-dense, unmasked (Bt, Cout_p) store (Cout padded to a multiple of 128).
    out_ref[...] = skip + res


def position_pooling(feature_maps, position, params, *, block_b=None,
                     stream_dtype=jnp.bfloat16):
    """feature_maps: (B, C, H, W), position: (B, 3) -> (B, Cout) f32."""
    B, C, H, W = feature_maps.shape
    HW = H * W
    ws, bs, w1, b1, w2, b2 = params
    Cout = ws.shape[1]
    Hd = w1.shape[1]
    f32 = jnp.float32

    # Pad the output feature axis to a multiple of 128 lanes so the per-step store
    # is one unmasked vst and output DMA rows are >= 512 B. MXU cost is unchanged.
    Cout_p = _round_up(Cout, 128)
    pad_c = Cout_p - Cout
    ws_p = jnp.pad(ws.astype(f32), ((0, 0), (0, pad_c)))
    bs_p = jnp.pad(bs.astype(f32).reshape(1, -1), ((0, 0), (0, pad_c)))
    w2_p = jnp.pad(w2.astype(f32), ((0, 0), (0, pad_c)))
    b2_p = jnp.pad(b2.astype(f32).reshape(1, -1), ((0, 0), (0, pad_c)))
    # Fuse skip Linear and first residual Linear into one (C, Cout_p + Hd) weight.
    wsw1 = jnp.concatenate([ws_p, w1.astype(f32)], axis=1)
    bsb1 = jnp.concatenate([bs_p, b1.astype(f32).reshape(1, -1)], axis=1)
    CHd = Cout_p + Hd

    # --- batch tile sizing: target >= 4 grid steps when the batch allows
    #     (pipelining + 2-TC sharding on v7x), bounded by per-generation VMEM. ---
    itemsize = np.dtype(stream_dtype).itemsize
    try:
        vmem_cap = int(pltpu.get_tpu_info().vmem_capacity_bytes)
    except Exception:
        vmem_cap = 64 << 20                      # conservative fallback (v7x per-TC)
    if block_b is None:
        B8 = _round_up(B, 8)
        target = _round_up(max(-(-B8 // 4), 1), 8)                 # ~4 grid steps
        fmap_row_bytes = C * HW * itemsize
        # double-buffered fmap tile gets at most ~half of VMEM (rest: params/out/scratch)
        max_by_vmem = max(8, int((vmem_cap // 2) // (2 * fmap_row_bytes)) // 8 * 8)
        block_b = max(8, min(B8, target, max_by_vmem, 512))
    Bp = _round_up(B, block_b)
    # Raise the scoped-VMEM limit above the 16/32 MiB defaults while leaving
    # headroom under physical capacity (64 MiB on v7x, 128 MiB on v5e/v6e).
    vmem_limit = int(min(vmem_cap * 4 // 5, 100 << 20))

    fm = feature_maps.reshape(B, C, HW).astype(stream_dtype)
    pos = position.astype(f32)
    if Bp != B:
        fm = jnp.pad(fm, ((0, Bp - B), (0, 0), (0, 0)))
        # benign pad rows: std stays nonzero so no Inf/NaN enters shared vregs
        pos = jnp.pad(pos, ((0, Bp - B), (0, 0)), constant_values=1.0)

    kernel = functools.partial(position_pooling_kernel, h=H, w=W, cout_p=Cout_p)

    grid_spec = pltpu.PrefetchScalarGridSpec(
        num_scalar_prefetch=0,
        grid=(Bp // block_b,),
        in_specs=[
            pl.BlockSpec((block_b, 3), lambda b: (b, 0)),          # position (x, y, std)
            pl.BlockSpec((block_b, C, HW), lambda b: (b, 0, 0)),   # feature maps (bf16)
            pl.BlockSpec((C, CHd), lambda b: (0, 0)),              # fused skip|lin1 W
            pl.BlockSpec((1, CHd), lambda b: (0, 0)),              # fused skip|lin1 b
            pl.BlockSpec((Hd, Cout_p), lambda b: (0, 0)),          # residual lin2 W
            pl.BlockSpec((1, Cout_p), lambda b: (0, 0)),           # residual lin2 b
        ],
        out_specs=pl.BlockSpec((block_b, Cout_p), lambda b: (b, 0)),
    )

    out = pl.pallas_call(
        kernel,
        out_shape=jax.ShapeDtypeStruct((Bp, Cout_p), jnp.float32),
        grid_spec=grid_spec,
        compiler_params=pltpu.CompilerParams(
            dimension_semantics=("parallel",),
            vmem_limit_bytes=vmem_limit),
    )(pos, fm, wsw1, bsb1, w2_p, b2_p)
    return out[:B, :Cout]


def position_pooling_ref(feature_maps, position, params):
    """Pure-JAX reference with the original module's semantics (f32)."""
    B, C, H, W = feature_maps.shape
    ws, bs, w1, b1, w2, b2 = params
    # linspace(-1, 1, n)[k] == k * 2/(n-1) - 1  (same formula as the kernel)
    gy1 = jnp.arange(H, dtype=jnp.float32) * (2.0 / max(H - 1, 1)) - 1.0
    gx1 = jnp.arange(W, dtype=jnp.float32) * (2.0 / max(W - 1, 1)) - 1.0
    gy, gx = jnp.meshgrid(gy1, gx1, indexing="ij")                  # (H, W)
    x = position[:, 0][:, None, None, None]
    y = position[:, 1][:, None, None, None]
    std = position[:, 2][:, None, None, None]
    mask = jnp.exp(-((gx[None, None] - x) ** 2 + (gy[None, None] - y) ** 2)
                   / (2.0 * std * std + 1e-16))                     # (B,1,H,W)
    mask = mask / (jnp.sum(mask, axis=(1, 2, 3), keepdims=True) + 1e-8)
    pooled = jnp.sum(mask * feature_maps, axis=(2, 3))              # (B,C)
    skip = pooled @ ws + bs
    h = pooled @ w1 + b1
    h = h * jax.nn.sigmoid(h)
    return skip + (h @ w2 + b2)


if __name__ == "__main__":
    # Small shapes consistent with the module: size=(16,16), in=4, out=8.
    B, Cin, Cout, H, W = 2, 4, 8, 16, 16
    Hd = max(Cin, Cout) * 4  # 32

    key = jax.random.PRNGKey(0)
    k = jax.random.split(key, 9)

    feature_maps = jax.random.normal(k[0], (B, Cin, H, W), jnp.float32)
    # position = (x, y, std): coords in [-1,1], std in [min_std, max_std]
    xy = jax.random.uniform(k[1], (B, 2), jnp.float32, -1.0, 1.0)
    std = jax.random.uniform(k[2], (B, 1), jnp.float32, 1.0 / min(H, W), 0.5)
    position = jnp.concatenate([xy, std], axis=1)

    # Deterministic parameter init (stored as (in, out), i.e. PyTorch W.T).
    ws = jax.random.normal(k[3], (Cin, Cout), jnp.float32) * 0.1
    bs = jax.random.normal(k[4], (1, Cout), jnp.float32) * 0.1
    w1 = jax.random.normal(k[5], (Cin, Hd), jnp.float32) * 0.1
    b1 = jax.random.normal(k[6], (1, Hd), jnp.float32) * 0.1
    w2 = jax.random.normal(k[7], (Hd, Cout), jnp.float32) * 0.1
    b2 = jax.random.normal(k[8], (1, Cout), jnp.float32) * 0.1
    params = (ws, bs, w1, b1, w2, b2)

    out = position_pooling(feature_maps, position, params)
    out = jax.block_until_ready(out)
    out_np = np.asarray(out)

    # 1) Kernel correctness, isolating the intentional bf16 streaming of the
    #    feature map: reference computed on the bf16-rounded fmap in f32. Residual
    #    differences come from the hoisted normalization, summation order and the
    #    EUP approx reciprocals.
    fm_q = feature_maps.astype(jnp.bfloat16).astype(jnp.float32)
    ref_q = position_pooling_ref(fm_q, position, params)
    np.testing.assert_allclose(out_np, np.asarray(ref_q), rtol=1e-2, atol=2e-4)

    # 2) End-to-end check against the full-f32 module semantics (covers the bf16
    #    quantization of the feature-map stream).
    ref = position_pooling_ref(feature_maps, position, params)
    np.testing.assert_allclose(out_np, np.asarray(ref), rtol=5e-2, atol=5e-3)

    print("KERNEL_OK")
</pallas_src>

<mosaic_0001>
module attributes {stable_mosaic.version = 11 : i64} {
  func.func @position_pooling_kernel(%arg0: i32, %arg1: memref<8x3xf32, #tpu.memory_space<vmem>>, %arg2: memref<8x4x256xbf16, #tpu.memory_space<vmem>>, %arg3: memref<4x160xf32, #tpu.memory_space<vmem>>, %arg4: memref<1x160xf32, #tpu.memory_space<vmem>>, %arg5: memref<32x128xf32, #tpu.memory_space<vmem>>, %arg6: memref<1x128xf32, #tpu.memory_space<vmem>>, %arg7: memref<8x128xf32, #tpu.memory_space<vmem>>) attributes {dimension_semantics = [#tpu.dimension_semantics<parallel>], iteration_bounds = array<i64: 1>, scalar_prefetch = 0 : i64, scratch_operands = 0 : i64, tpu.core_type = #tpu.core_type<tc>, window_params = [{transform_indices = @transform_0, window_bounds = array<i64: 8, 3>}, {transform_indices = @transform_1, window_bounds = array<i64: 8, 4, 256>}, {pipeline_mode = #tpu.pipeline_mode<synchronous>, transform_indices = @transform_2, window_bounds = array<i64: 4, 160>}, {pipeline_mode = #tpu.pipeline_mode<synchronous>, transform_indices = @transform_3, window_bounds = array<i64: 1, 160>}, {pipeline_mode = #tpu.pipeline_mode<synchronous>, transform_indices = @transform_4, window_bounds = array<i64: 32, 128>}, {pipeline_mode = #tpu.pipeline_mode<synchronous>, transform_indices = @transform_5, window_bounds = array<i64: 1, 128>}, {transform_indices = @transform_6, window_bounds = array<i64: 8, 128>}]} {
    %c0 = arith.constant 0 : index
    %c0_0 = arith.constant 0 : index
    %0 = vector.load %arg1[%c0, %c0_0] : memref<8x3xf32, #tpu.memory_space<vmem>>, vector<8x3xf32>
    %1 = vector.extract_strided_slice %0 {offsets = [0, 0], sizes = [8, 1], strides = [1, 1]} : vector<8x3xf32> to vector<8x1xf32>
    %2 = vector.extract_strided_slice %0 {offsets = [0, 1], sizes = [8, 1], strides = [1, 1]} : vector<8x3xf32> to vector<8x1xf32>
    %3 = vector.extract_strided_slice %0 {offsets = [0, 2], sizes = [8, 1], strides = [1, 1]} : vector<8x3xf32> to vector<8x1xf32>
    %4 = tpu.iota {dimensions = array<i32: 1>} : vector<1x256xi32>
    %5 = arith.sitofp %4 : vector<1x256xi32> to vector<1x256xf32>
    %cst = arith.constant 5.000000e-01 : f32
    %6 = vector.broadcast %cst : f32 to vector<1x256xf32>
    %7 = arith.addf %5, %6 : vector<1x256xf32>
    %cst_1 = arith.constant 6.250000e-02 : f32
    %8 = vector.broadcast %cst_1 : f32 to vector<1x256xf32>
    %9 = arith.mulf %7, %8 : vector<1x256xf32>
    %10 = math.floor %9 : vector<1x256xf32>
    %cst_2 = arith.constant 1.600000e+01 : f32
    %11 = vector.broadcast %cst_2 : f32 to vector<1x256xf32>
    %12 = arith.mulf %10, %11 : vector<1x256xf32>
    %13 = arith.subf %5, %12 : vector<1x256xf32>
    %cst_3 = arith.constant 0.13333334 : f32
    %14 = vector.broadcast %cst_3 : f32 to vector<1x256xf32>
    %15 = arith.mulf %10, %14 : vector<1x256xf32>
    %cst_4 = arith.constant 1.000000e+00 : f32
    %16 = vector.broadcast %cst_4 : f32 to vector<1x256xf32>
    %17 = arith.subf %15, %16 : vector<1x256xf32>
    %cst_5 = arith.constant 0.13333334 : f32
    %18 = vector.broadcast %cst_5 : f32 to vector<1x256xf32>
    %19 = arith.mulf %13, %18 : vector<1x256xf32>
    %cst_6 = arith.constant 1.000000e+00 : f32
    %20 = vector.broadcast %cst_6 : f32 to vector<1x256xf32>
    %21 = arith.subf %19, %20 : vector<1x256xf32>
    %22 = vector.broadcast %21 : vector<1x256xf32> to vector<8x256xf32>
    %23 = vector.broadcast %1 : vector<8x1xf32> to vector<8x256xf32>
    %24 = arith.subf %22, %23 : vector<8x256xf32>
    %25 = vector.broadcast %17 : vector<1x256xf32> to vector<8x256xf32>
    %26 = vector.broadcast %2 : vector<8x1xf32> to vector<8x256xf32>
    %27 = arith.subf %25, %26 : vector<8x256xf32>
    %cst_7 = arith.constant 2.000000e+00 : f32
    %28 = vector.broadcast %cst_7 : f32 to vector<8x1xf32>
    %29 = arith.mulf %28, %3 : vector<8x1xf32>
    %30 = arith.mulf %29, %3 : vector<8x1xf32>
    %cst_8 = arith.constant 1.000000e-16 : f32
    %31 = vector.broadcast %cst_8 : f32 to vector<8x1xf32>
    %32 = arith.addf %30, %31 : vector<8x1xf32>
    %33 = tpu.reciprocal %32 {approx = true} : vector<8x1xf32> -> vector<8x1xf32>
    %cst_9 = arith.constant 0.000000e+00 : f32
    %34 = vector.broadcast %cst_9 : f32 to vector<8x1xf32>
    %35 = arith.subf %34, %33 : vector<8x1xf32>
    %36 = arith.mulf %24, %24 : vector<8x256xf32>
    %37 = arith.mulf %27, %27 : vector<8x256xf32>
    %38 = arith.addf %36, %37 : vector<8x256xf32>
    %39 = vector.broadcast %35 : vector<8x1xf32> to vector<8x256xf32>
    %40 = arith.mulf %38, %39 : vector<8x256xf32>
    %41 = math.exp %40 : vector<8x256xf32>
    %cst_10 = arith.constant dense<0.000000e+00> : vector<8xf32>
    %42 = vector.multi_reduction <add>, %41, %cst_10 [1] : vector<8x256xf32> to vector<8xf32>
    %43 = vector.shape_cast %42 : vector<8xf32> to vector<8x1xf32>
    %cst_11 = arith.constant 9.99999993E-9 : f32
    %44 = vector.broadcast %cst_11 : f32 to vector<8x1xf32>
    %45 = arith.addf %43, %44 : vector<8x1xf32>
    %46 = tpu.reciprocal %45 {approx = true} : vector<8x1xf32> -> vector<8x1xf32>
    %c0_12 = arith.constant 0 : index
    %c0_13 = arith.constant 0 : index
    %c0_14 = arith.constant 0 : index
    %47 = vector.load %arg2[%c0_12, %c0_13, %c0_14] : memref<8x4x256xbf16, #tpu.memory_space<vmem>>, vector<8x4x256xbf16>
    %48 = arith.extf %47 : vector<8x4x256xbf16> to vector<8x4x256xf32>
    %49 = vector.shape_cast %41 : vector<8x256xf32> to vector<8x1x256xf32>
    %50 = vector.broadcast %49 : vector<8x1x256xf32> to vector<8x4x256xf32>
    %51 = arith.mulf %50, %48 : vector<8x4x256xf32>
    %cst_15 = arith.constant dense<0.000000e+00> : vector<8x4xf32>
    %52 = vector.multi_reduction <add>, %51, %cst_15 [2] : vector<8x4x256xf32> to vector<8x4xf32>
    %53 = vector.broadcast %46 : vector<8x1xf32> to vector<8x4xf32>
    %54 = arith.mulf %52, %53 : vector<8x4xf32>
    %c0_16 = arith.constant 0 : index
    %c0_17 = arith.constant 0 : index
    %55 = vector.load %arg3[%c0_16, %c0_17] : memref<4x160xf32, #tpu.memory_space<vmem>>, vector<4x160xf32>
    %cst_18 = arith.constant dense<0.000000e+00> : vector<8x160xf32>
    %56 = tpu.matmul %54, %55, %cst_18 {dimension_numbers = #tpu.dot_dimension_numbers<[1], [0], [0], [1], [0, 0, 1, 1], [], []>} : vector<8x4xf32>, vector<4x160xf32>, vector<8x160xf32> -> vector<8x160xf32>
    %c0_19 = arith.constant 0 : index
    %c0_20 = arith.constant 0 : index
    %57 = vector.load %arg4[%c0_19, %c0_20] : memref<1x160xf32, #tpu.memory_space<vmem>>, vector<1x160xf32>
    %58 = vector.broadcast %57 : vector<1x160xf32> to vector<8x160xf32>
    %59 = arith.addf %56, %58 : vector<8x160xf32>
    %60 = vector.extract_strided_slice %59 {offsets = [0, 0], sizes = [8, 128], strides = [1, 1]} : vector<8x160xf32> to vector<8x128xf32>
    %61 = vector.extract_strided_slice %59 {offsets = [0, 128], sizes = [8, 32], strides = [1, 1]} : vector<8x160xf32> to vector<8x32xf32>
    %62 = arith.negf %61 : vector<8x32xf32>
    %63 = math.exp %62 : vector<8x32xf32>
    %cst_21 = arith.constant 1.000000e+00 : f32
    %64 = vector.broadcast %cst_21 : f32 to vector<8x32xf32>
    %65 = arith.addf %64, %63 : vector<8x32xf32>
    %66 = arith.divf %64, %65 : vector<8x32xf32>
    %67 = arith.mulf %61, %66 : vector<8x32xf32>
    %c0_22 = arith.constant 0 : index
    %c0_23 = arith.constant 0 : index
    %68 = vector.load %arg5[%c0_22, %c0_23] : memref<32x128xf32, #tpu.memory_space<vmem>>, vector<32x128xf32>
    %cst_24 = arith.constant dense<0.000000e+00> : vector<8x128xf32>
    %69 = tpu.matmul %67, %68, %cst_24 {dimension_numbers = #tpu.dot_dimension_numbers<[1], [0], [0], [1], [0, 0, 1, 1], [], []>} : vector<8x32xf32>, vector<32x128xf32>, vector<8x128xf32> -> vector<8x128xf32>
    %c0_25 = arith.constant 0 : index
    %c0_26 = arith.constant 0 : index
    %70 = vector.load %arg6[%c0_25, %c0_26] : memref<1x128xf32, #tpu.memory_space<vmem>>, vector<1x128xf32>
    %71 = vector.broadcast %70 : vector<1x128xf32> to vector<8x128xf32>
    %72 = arith.addf %69, %71 : vector<8x128xf32>
    %73 = arith.addf %60, %72 : vector<8x128xf32>
    %c0_27 = arith.constant 0 : index
    %c0_28 = arith.constant 0 : index
    %74 = vector.load %arg7[%c0_27, %c0_28] : memref<8x128xf32, #tpu.memory_space<vmem>>, vector<8x128xf32>
    tpu.vector_store %arg7[%c0_27, %c0_28], %73 {strides = array<i32>} : memref<8x128xf32, #tpu.memory_space<vmem>>, vector<8x128xf32>,
    return
  }
  func.func @transform_0(%arg0: i32) -> (i32, i32) {
    %c0_i32 = arith.constant 0 : i32
    %c0_i32_0 = arith.constant 0 : i32
    return %arg0, %c0_i32 : i32, i32
  }
  func.func @transform_1(%arg0: i32) -> (i32, i32, i32) {
    %c0_i32 = arith.constant 0 : i32
    %c0_i32_0 = arith.constant 0 : i32
    %c0_i32_1 = arith.constant 0 : i32
    return %arg0, %c0_i32, %c0_i32_0 : i32, i32, i32
  }
  func.func @transform_2(%arg0: i32) -> (i32, i32) {
    %c0_i32 = arith.constant 0 : i32
    %c0_i32_0 = arith.constant 0 : i32
    %c0_i32_1 = arith.constant 0 : i32
    return %c0_i32, %c0_i32_0 : i32, i32
  }
  func.func @transform_3(%arg0: i32) -> (i32, i32) {
    %c0_i32 = arith.constant 0 : i32
    %c0_i32_0 = arith.constant 0 : i32
    %c0_i32_1 = arith.constant 0 : i32
    return %c0_i32, %c0_i32_0 : i32, i32
  }
  func.func @transform_4(%arg0: i32) -> (i32, i32) {
    %c0_i32 = arith.constant 0 : i32
    %c0_i32_0 = arith.constant 0 : i32
    %c0_i32_1 = arith.constant 0 : i32
    return %c0_i32, %c0_i32_0 : i32, i32
  }
  func.func @transform_5(%arg0: i32) -> (i32, i32) {
    %c0_i32 = arith.constant 0 : i32
    %c0_i32_0 = arith.constant 0 : i32
    %c0_i32_1 = arith.constant 0 : i32
    return %c0_i32, %c0_i32_0 : i32, i32
  }
  func.func @transform_6(%arg0: i32) -> (i32, i32) {
    %c0_i32 = arith.constant 0 : i32
    %c0_i32_0 = arith.constant 0 : i32
    return %arg0, %c0_i32 : i32, i32
  }
}

</mosaic_0001>

<bundles_post_ra>
// kernel: tpu_custom_call.1
= control target key start
LH: loop header
LB: loop body
LE: loop exit
PB: predicated region body
PF: predicated region fallthrough
CT: control target
= control target key end

     0   :  { %11 = vsyncpa [#allocation3], 0  ;;  %s1001_s0 = inlined_call_operand.vmem [shape: f32[8,3], index: 0, kind: input, shape index: {}]   ;;  %s1002_s1 = inlined_call_operand.hbm [shape: bf16[8,4,256], index: 1, kind: input, shape index: {}]   ;;  %s1003_s2 = inlined_call_operand.vmem [shape: f32[4,160], index: 2, kind: input, shape index: {}]   ;;  %s1004_s3 = inlined_call_operand.vmem [shape: f32[1,160], index: 3, kind: input, shape index: {}]   ;;  %s1005_s4 = inlined_call_operand.hbm [shape: f32[32,128], index: 4, kind: input, shape index: {}]   ;;  %s1006_s5 = inlined_call_operand.vmem [shape: f32[1,128], index: 5, kind: input, shape index: {}]   ;;  %s1007_s6 = inlined_call_operand.hbm [shape: f32[8,128], index: 6, kind: output, shape index: {}]  }
   0x1   :  { %12 = vsyncpa [#allocation6], 0 }
   0x2   :  { %13 = vsyncpa [#allocation4], 0  ;;  %s830_s21 = smov [#allocation2]   ;;  %s758_s25 = scalar_lea.hbm %s1002_s1, 512 }
   0x3   :  { %s21_s22 = sshll.u32 %s830_s21, 4  ;;  %p759_p0 = scmp.ne.s32.totalorder %s1002_s1, %s758_s25  ;;  %s22_s22 = int_to_ptr.vmem [resolvable:$true] %s21_s22 }
   0x4   :  { %p762_p1 = scmp.lt.u32.totalorder %s758_s25, %s1002_s1 }
   0x6   :  { %p764_p2 = pnand %p762_p1, %p759_p0 }
   0x8   :  { %767 = shalt.err (!%p764_p2)
}
   0x9   :  { %s768_s30 = scalar_lea.vmem %s22_s22, 512  ;;  %p773_p4 = scmp.lt.s32.totalorder %s22_s22, %s22_s22 }
   0xa   :  { %p769_p3 = scmp.ne.s32.totalorder %s22_s22, %s768_s30  ;;  %p774_p5 = scmp.lt.s32.totalorder %s768_s30, %s768_s30 }
   0xc   :  { %p775_p6 = por %p774_p5, %p773_p4 }
   0xe   :  { %p776_p7 = pnand %p775_p6, %p769_p3 }
  0x10   :  { %779 = shalt.err (!%p776_p7)
}
  0x11   :  { %s831_s7 = smov 64   ;;  %s832_s8 = smov 4  }
  0x12   :  { %27 = dma.hbm_to_vmem [thread:$0]  %s1002_s1, 512, %s22_s22, [#allocation3], %s831_s7, %s831_s7, %s832_s8  }
  0x13   :  { %s833_s11 = smov [#allocation5]   ;;  %s780_s15 = scalar_lea.hbm %s1005_s4, 512 }
  0x14   :  { %s37_s12 = sshll.u32 %s833_s11, 4  ;;  %p781_p8 = scmp.ne.s32.totalorder %s1005_s4, %s780_s15  ;;  %s38_s12 = int_to_ptr.vmem [resolvable:$true] %s37_s12 }
  0x15   :  { %p784_p9 = scmp.lt.u32.totalorder %s780_s15, %s1005_s4 }
  0x17   :  { %p786_p10 = pnand %p784_p9, %p781_p8 }
  0x19   :  { %789 = shalt.err (!%p786_p10)
}
  0x1a   :  { %s790_s20 = scalar_lea.vmem %s38_s12, 512  ;;  %p795_p12 = scmp.lt.s32.totalorder %s38_s12, %s38_s12 }
  0x1b   :  { %p791_p11 = scmp.ne.s32.totalorder %s38_s12, %s790_s20  ;;  %p796_p13 = scmp.lt.s32.totalorder %s790_s20, %s790_s20 }
  0x1d   :  { %p797_p0 = por %p796_p13, %p795_p12 }
  0x1f   :  { %p798_p1 = pnand %p797_p0, %p791_p11 }
  0x21   :  { %801 = shalt.err (!%p798_p1)
}
  0x22   :  { %s834_s1 = smov 128   ;;  %s835_s21 = smov 8  }
  0x23   :  { %43 = dma.hbm_to_vmem [thread:$0]  %s1005_s4, 512, %s38_s12, [#allocation6], %s834_s1, %s834_s1, %s835_s21  }
  0x24   :  { %824 = dma.done.wait [#allocation3], 512  }
  0x25   :  { %825 = vsyncadd [#allocation3], 4294966784 }
  0x26   :  { %826 = dma.done.wait [#allocation6], 512  }
  0x27   :  { %827 = vsyncadd [#allocation6], 4294966784  ;;  %v836_v0 = vmov 0   ;;  %v837_v1 = vmov 2   ;;  %v52_v2 = vld [vmem:[%s1001_s0] sm:$0xff]  ;;  %v838_v5 = vmov 1   ;;  %v53_v9 = vlaneseq }
  0x28   :  { %740 = vset.pattern.permute.xlu0 %v836_v0  ;;  %742 = vset.pattern.permute.xlu1 %v837_v1  ;;  %v89_v3 = vmul.f32 2.0, %v52_v2  ;;  %v839_v49 = vmov 1966171168   ;;  %v686_v53 = vld [vmem:[#allocation2] sm:$0xff]   ;;  %v702_v54 = vld [vmem:[#allocation2 + $0x10] sm:$0xff]   ;;  %v701_v58 = vld [vmem:[#allocation2 + $0x8] sm:$0xff]  }
  0x29   :  { %78 = vperm.xlu0 %740, %v52_v2   ;;  %v906_v10 = vand.u32 127, %v53_v9  ;;  %v137_v50 = vunpack.c.l.s4 %v839_v49  ;;  %v910_v51 = vshrl.u32 %v53_v9, 7  ;;  %v687_v56 = vunpack.c.l.bf16 %v686_v53  ;;  %v703_v59 = vld [vmem:[#allocation2 + $0x18] sm:$0xff]  }
  0x2a   :  { %v90_v4 = vmul.f32 %v89_v3, %v52_v2  ;;  %v688_v61 = vunpack.c.h.bf16 %v686_v53  ;;  %v695_v62 = vunpack.c.l.bf16 %v702_v54  ;;  %v696_v63 = vunpack.c.h.bf16 %v702_v54 }
  0x2b   :  { %v55_v11 = vadd.s32 128, %v906_v10  ;;  %v56_v12 = vcvt.s32.f32 %v906_v10  ;;  %v138_v52 = vunpack.c.0.s8 %v137_v50  ;;  %v923_v9 = vsub.s32 1, %v910_v51 }
  0x2c   :  { %v91_v6 = vadd.f32 1e-16, %v90_v4  ;;  %v691_v4 = vunpack.c.l.bf16 %v701_v58  ;;  %vm304_vm0 = vcmask 1043456   ;;  %vm471_vm1 = vcmask 1041409  }
  0x2d   :  { %741 = vset.pattern.permute.xlu0 %v838_v5  ;;  %v57_v13 = vcvt.s32.f32 %v55_v11  ;;  %v58_v14 = vadd.f32 0.5, %v56_v12  ;;  %v141_v57 = vsub.s32 %v138_v52, %v910_v51  ;;  %v916_v5 = vunpack.c.h.bf16 %v701_v58 }
  0x2e   :  { %84 = vperm.xlu0 %741, %v52_v2   ;;  %746 = vrcp.f32 %v91_v6  ;;  %v914_v2 = vsub.s32 0, %v910_v51  ;;  %v918_v6 = vunpack.c.l.bf16 %v703_v59  ;;  %v272_v11 = vcombine.high %v687_v56, %v687_v56 }
  0x2f   :  { %v59_v15 = vadd.f32 0.5, %v57_v13  ;;  %v60_v16 = vmul.f32 0.0625, %v58_v14  ;;  %v276_v14 = vcombine.high %v695_v62, %v695_v62  ;;  %vm473_vm2 = vcmask 1042434  }
  0x30   :  { %vm475_vm3 = vcmask 1043459   ;;  %vm477_vm4 = vcmask 1044484   ;;  %vm479_vm5 = vcmask 1045509   ;;  %vm481_vm6 = vcmask 1046534  }
  0x31   :  { %v61_v17 = vmul.f32 0.0625, %v59_v15  ;;  %v62_v18 = vfloor.f32 %v60_v16  ;;  %v277_v15 = vcombine.high %v696_v63, %v696_v63  ;;  %vm483_vm7 = vcmask 1047559  }
  0x32   :  { %743 = vset.pattern.permute.xlu0 %v836_v0  ;;  %vm487_vm8 = vcmask 31744   ;;  %vm842_vm9 = vmmov 0   ;;  %vm583_vm10 = vcmask 261120  }
  0x33   :  { %v63_v19 = vfloor.f32 %v61_v17  ;;  %v64_v20 = vmul.f32 16.0, %v62_v18  ;;  %v68_v25 = vmul.f32 0.13333334, %v62_v18 }
  0x35   :  { %v65_v21 = vmul.f32 16.0, %v63_v19  ;;  %v66_v22 = vsub.f32 %v56_v12, %v64_v20  ;;  %v69_v28 = vmul.f32 0.13333334, %v63_v19  ;;  %v675_v31 = vadd.f32 -1.0, %v68_v25 }
  0x36   :  { %v274_v20 = vcombine.high %v691_v4, %v691_v4 }
  0x37   :  { %v67_v23 = vsub.f32 %v57_v13, %v65_v21  ;;  %v72_v26 = vmul.f32 0.13333334, %v66_v22  ;;  %v676_v32 = vadd.f32 -1.0, %v69_v28  ;;  %v273_v13 = vcombine.high %v688_v61, %v688_v61 }
  0x38   :  { %v747_v7 = vpop.eup %746  ;;  %v275_v21 = vcombine.high %v916_v5, %v916_v5  ;;  %v278_v22 = vcombine.high %v918_v6, %v918_v6 }
  0x39   :  { %v93_v8 = vsub.f32 0.0, %v747_v7  ;;  %v73_v27 = vmul.f32 0.13333334, %v67_v23  ;;  %v677_v29 = vadd.f32 -1.0, %v72_v26  ;;  %v920_v7 = vunpack.c.h.bf16 %v703_v59 }
  0x3b   :  { %102 = vperm.xlu1 %742, %v93_v8   ;;  %v678_v30 = vadd.f32 -1.0, %v73_v27  ;;  %v279_v23 = vcombine.high %v920_v7, %v920_v7 }
  0x3f   :  { %744 = vset.pattern.permute.xlu1 %v836_v0 }
  0xa8   :  { %v79_v24 = vpop.permute.xlu0 %78 }
  0xa9   :  { %v81_v34 = vsub.f32 %v677_v29, %v79_v24  ;;  %v82_v35 = vsub.f32 %v678_v30, %v79_v24 }
  0xab   :  { %v94_v38 = vmul.f32 %v81_v34, %v81_v34  ;;  %v95_v39 = vmul.f32 %v82_v35, %v82_v35 }
  0xad   :  { %v85_v33 = vpop.permute.xlu0 %84 }
  0xae   :  { %v87_v36 = vsub.f32 %v675_v31, %v85_v33  ;;  %v88_v37 = vsub.f32 %v676_v32, %v85_v33 }
  0xb0   :  { %v96_v40 = vmul.f32 %v87_v36, %v87_v36  ;;  %v97_v41 = vmul.f32 %v88_v37, %v88_v37 }
  0xb2   :  { %v98_v42 = vadd.f32 %v96_v40, %v94_v38  ;;  %v99_v43 = vadd.f32 %v97_v41, %v95_v39 }
  0xba   :  { %v103_v44 = vpop.permute.xlu1 %102 }
  0xbb   :  { %v105_v45 = vmul.f32 %v103_v44, %v98_v42  ;;  %v106_v46 = vmul.f32 %v103_v44, %v99_v43 }
  0xbd   :  { %v107_v47 = vmul.f32 1.442695, %v105_v45  ;;  %v109_v48 = vmul.f32 1.442695, %v106_v46 }
  0xbf   :  { %748 = vpow2.f32 %v107_v47 }
  0xc0   :  { %750 = vpow2.f32 %v109_v48 }
  0xc9   :  { %v749_v55 = vpop.eup %748 }
  0xca   :  { %v751_v60 = vpop.eup %750 }
  0xcb   :  { %v111_v0 = vadd.f32 %v751_v60, %v749_v55  ;;  %v134_v1 = vcombine.low %v749_v55, %v751_v60  ;;  %v135_v3 = vcombine.high %v749_v55, %v751_v60 }
  0xcd   :  { %112 = vadd.xlane.f32.xlu1 %v111_v0  ;;  %v142_v8 = vrot.slane %v134_v1, %v141_v57  ;;  %v149_v12 = vrot.slane %v135_v3, %v141_v57 }
  0xcf   :  { %v158_v16 = vrot.slane %v142_v8, %v141_v57  ;;  %v150_v17 = vcombine.high %v142_v8, %v142_v8  ;;  %v165_v18 = vrot.slane %v149_v12, %v141_v57  ;;  %v151_v19 = vcombine.high %v149_v12, %v149_v12 }
  0xd1   :  { %v187_v24 = vrot.slane %v158_v16, %v914_v2  ;;  %v191_v25 = vrot.slane %v158_v16, %v923_v9  ;;  %v172_v26 = vrot.slane %v150_v17, %v141_v57  ;;  %v219_v27 = vrot.slane %v165_v18, %v914_v2 }
  0xd2   :  { %v223_v28 = vrot.slane %v165_v18, %v923_v9  ;;  %v179_v29 = vrot.slane %v151_v19, %v141_v57  ;;  %v180_v30 = vcombine.high %v158_v16, %v158_v16  ;;  %v181_v31 = vcombine.high %v165_v18, %v165_v18 }
  0xd3   :  { %v288_v32 = vmul.f32 %v687_v56, %v187_v24  ;;  %v289_v33 = vmul.f32 %v272_v11, %v191_v25  ;;  %v195_v34 = vrot.slane %v172_v26, %v914_v2  ;;  %v199_v35 = vrot.slane %v172_v26, %v923_v9 }
  0xd4   :  { %v296_v36 = vmul.f32 %v695_v62, %v219_v27  ;;  %v297_v37 = vmul.f32 %v276_v14, %v223_v28  ;;  %v227_v38 = vrot.slane %v179_v29, %v914_v2  ;;  %v231_v39 = vrot.slane %v179_v29, %v923_v9 }
  0xd5   :  { %v305_v40 = vsel %vm304_vm0, %v288_v32, 0.0  ;;  %v306_v41 = vsel %vm304_vm0, %v289_v33, 0.0  ;;  %v290_v42 = vmul.f32 %v688_v61, %v195_v34  ;;  %v291_v43 = vmul.f32 %v273_v13, %v199_v35 }
  0xd6   :  { %v307_v44 = vadd.f32 %v306_v41, %v305_v40  ;;  %v325_v45 = vsel %vm304_vm0, %v296_v36, 0.0  ;;  %v326_v46 = vsel %vm304_vm0, %v297_v37, 0.0  ;;  %v298_v47 = vmul.f32 %v696_v63, %v227_v38 }
  0xd7   :  { %v310_v48 = vsel %vm304_vm0, %v290_v42, 0.0  ;;  %v311_v49 = vsel %vm304_vm0, %v291_v43, 0.0  ;;  %v327_v50 = vadd.f32 %v326_v46, %v325_v45  ;;  %v299_v52 = vmul.f32 %v277_v15, %v231_v39 }
  0xd8   :  { %308 = vadd.xlane.f32.xlu0 %v307_v44  ;;  %v312_v53 = vadd.f32 %v311_v49, %v310_v48  ;;  %v330_v54 = vsel %vm304_vm0, %v298_v47, 0.0  ;;  %v203_v55 = vrot.slane %v180_v30, %v914_v2  ;;  %v207_v56 = vrot.slane %v180_v30, %v923_v9 }
  0xd9   :  { %v331_v57 = vsel %vm304_vm0, %v299_v52, 0.0  ;;  %v182_v58 = vcombine.high %v172_v26, %v172_v26  ;;  %v235_v59 = vrot.slane %v181_v31, %v914_v2  ;;  %v239_v60 = vrot.slane %v181_v31, %v923_v9 }
  0xda   :  { %313 = vadd.xlane.f32.xlu1 %v312_v53  ;;  %v332_v61 = vadd.f32 %v331_v57, %v330_v54  ;;  %v292_v62 = vmul.f32 %v691_v4, %v203_v55  ;;  %v293_v63 = vmul.f32 %v274_v20, %v207_v56  ;;  %v183_v0 = vcombine.high %v179_v29, %v179_v29 }
  0xdb   :  { %v211_v1 = vrot.slane %v182_v58, %v914_v2  ;;  %v215_v3 = vrot.slane %v182_v58, %v923_v9  ;;  %v300_v8 = vmul.f32 %v918_v6, %v235_v59  ;;  %v301_v11 = vmul.f32 %v278_v22, %v239_v60  ;;  %v394_v60 = vld [vmem:[%s1003_s2] sm:$0xff] }
  0xdc   :  { %328 = vadd.xlane.f32.xlu0 %v327_v50  ;;  %v315_v12 = vsel %vm304_vm0, %v292_v62, 0.0  ;;  %v316_v13 = vsel %vm304_vm0, %v293_v63, 0.0  ;;  %v243_v14 = vrot.slane %v183_v0, %v914_v2  ;;  %v247_v15 = vrot.slane %v183_v0, %v923_v9 }
  0xdd   :  { %v294_v4 = vmul.f32 %v916_v5, %v211_v1  ;;  %v295_v16 = vmul.f32 %v275_v21, %v215_v3  ;;  %v317_v17 = vadd.f32 %v316_v13, %v315_v12  ;;  %v335_v22 = vsel %vm304_vm0, %v300_v8, 0.0 }
  0xde   :  { %333 = vadd.xlane.f32.xlu1 %v332_v61  ;;  %v302_v18 = vmul.f32 %v920_v7, %v243_v14  ;;  %v303_v19 = vmul.f32 %v279_v23, %v247_v15  ;;  %v336_v24 = vsel %vm304_vm0, %v301_v11, 0.0  ;;  %v356_v33 = vsub.s32 2, %v910_v51 }
  0xdf   :  { %v320_v6 = vsel %vm304_vm0, %v294_v4, 0.0  ;;  %v321_v20 = vsel %vm304_vm0, %v295_v16, 0.0  ;;  %v337_v21 = vadd.f32 %v336_v24, %v335_v22  ;;  %v360_v39 = vsub.s32 3, %v910_v51 }
  0xe0   :  { %318 = vadd.xlane.f32.xlu0 %v317_v17  ;;  %v322_v25 = vadd.f32 %v321_v20, %v320_v6  ;;  %v340_v26 = vsel %vm304_vm0, %v302_v18, 0.0  ;;  %v341_v5 = vsel %vm304_vm0, %v303_v19, 0.0  ;;  %v364_v41 = vsub.s32 4, %v910_v51 }
  0xe1   :  { %v342_v27 = vadd.f32 %v341_v5, %v340_v26  ;;  %v368_v47 = vsub.s32 5, %v910_v51  ;;  %v372_v50 = vsub.s32 6, %v910_v51  ;;  %v376_v55 = vsub.s32 7, %v910_v51 }
  0xe2   :  { %323 = vadd.xlane.f32.xlu1 %v322_v25  ;;  %v486_v61 = vcombine.high %v394_v60, %v394_v60  ;;  %v840_v62 = vmov 0.0   ;;  %v441_v8 = vsub.s32 %v906_v10, %v910_v51 }
  0xe3   :  { %558 = vmatprep.mubr.f32.mxu0 %v840_v62  ;;  %717 = vmatprep.mubr.msk.f32.mxu1 %vm842_vm9, %v840_v62 }
  0xe4   :  { %338 = vadd.xlane.f32.xlu0 %v337_v21  ;;  %679 = vmatprep.subr.msk.mxu0 %vm304_vm0, %v486_v61  ;;  %v572_v21 = vld [vmem:[#allocation5] sm:$0xff] }
  0xe5   :  { %680 = vmatpush1.msk.msra.mxu0 %vm304_vm0, %v394_v60 }
  0xe6   :  { %343 = vadd.xlane.f32.xlu1 %v342_v27  ;;  %v573_v27 = vld [vmem:[#allocation5 + $0x8] sm:$0xff] }
 0x15a   :  { %v113_v7 = vpop.xlane.xlu1 %112 }
 0x15b   :  { %v114_v23 = vadd.f32 1e-08, %v113_v7  ;;  %v721_v7 = vpack.c.bf16 %v573_v27, %v572_v21 }
 0x15d   :  { %752 = vrcp.f32 %v114_v23  ;;  %v574_v23 = vld [vmem:[#allocation5 + $0x10] sm:$0xff] }
 0x165   :  { %v309_v28 = vpop.xlane.xlu0 %308 }
 0x167   :  { %v753_v29 = vpop.eup %752  ;;  %v314_v30 = vpop.xlane.xlu1 %313 }
 0x168   :  { %v349_v31 = vrot.slane %v753_v29, %v914_v2  ;;  %v353_v32 = vrot.slane %v753_v29, %v923_v9  ;;  %v357_v38 = vrot.slane %v753_v29, %v356_v33  ;;  %v361_v44 = vrot.slane %v753_v29, %v360_v39 }
 0x169   :  { %v329_v34 = vpop.xlane.xlu0 %328  ;;  %v365_v45 = vrot.slane %v753_v29, %v364_v41  ;;  %v369_v49 = vrot.slane %v753_v29, %v368_v47  ;;  %v373_v54 = vrot.slane %v753_v29, %v372_v50  ;;  %v377_v58 = vrot.slane %v753_v29, %v376_v55 }
 0x16a   :  { %v386_v35 = vmul.f32 %v349_v31, %v309_v28  ;;  %v387_v36 = vmul.f32 %v353_v32, %v314_v30  ;;  %v575_v28 = vld [vmem:[#allocation5 + $0x18] sm:$0xff]  ;;  %v841_v29 = vmov 0.0|0.0  }
 0x16b   :  { %v334_v37 = vpop.xlane.xlu1 %333  ;;  %v390_v48 = vmul.f32 %v365_v45, %v329_v34  ;;  %720 = vmatprep.subr.bf16.mxu1 %v841_v29  ;;  %v724_v30 = vpack.c.bf16 %v575_v28, %v574_v23  ;;  %v395_v31 = vld [vmem:[%s1004_s3] sm:$0x3]  ;;  %s843_s3 = smov [#allocation7]  }
 0x16c   :  { %416 = vperm.xlu0 %743, %v386_v35   ;;  %419 = vperm.xlu1 %744, %v387_v36   ;;  %v391_v52 = vmul.f32 %v369_v49, %v334_v37  ;;  %v404_v32 = vrot.slane %v395_v31, %v923_v9  ;;  %v400_v41 = vrot.slane %v395_v31, %v914_v2  ;;  %s665_s29 = sshll.u32 %s843_s3, 4  ;;  %s666_s29 = int_to_ptr.vmem [resolvable:$true] %s665_s29 }
 0x16d   :  { %v319_v40 = vpop.xlane.xlu0 %318  ;;  %722 = vmatpush3.bf16.msra.mxu1 %v721_v7  ;;  %s802_s30 = scalar_lea.vmem %s666_s29, 128  ;;  %p807_p3 = scmp.lt.s32.totalorder %s666_s29, %s666_s29 }
 0x16e   :  { %v388_v42 = vmul.f32 %v357_v38, %v319_v40  ;;  %723 = vmatprep.subr.bf16.mxu1 %v841_v29  ;;  %p803_p2 = scmp.ne.s32.totalorder %s666_s29, %s802_s30  ;;  %p808_p4 = scmp.lt.s32.totalorder %s802_s30, %s802_s30 }
 0x16f   :  { %v324_v43 = vpop.xlane.xlu1 %323 }
 0x170   :  { %422 = vperm.xlu1 %744, %v388_v42   ;;  %v389_v46 = vmul.f32 %v361_v44, %v324_v43  ;;  %v683_v42 = vld [vmem:[%s1006_s5] ss:$0 sm:$0xff]  ;;  %p809_p5 = por %p808_p4, %p807_p3 }
 0x171   :  { %v339_v53 = vpop.xlane.xlu0 %338  ;;  %725 = vmatpush3.bf16.msra.mxu1 %v724_v30 }
 0x172   :  { %v392_v56 = vmul.f32 %v373_v54, %v339_v53  ;;  %p810_p6 = pnand %p809_p5, %p803_p2 }
 0x173   :  { %v344_v57 = vpop.xlane.xlu1 %343 }
 0x174   :  { %425 = vperm.xlu1 %744, %v389_v46   ;;  %v393_v59 = vmul.f32 %v377_v58, %v344_v57 }
 0x178   :  { %428 = vperm.xlu1 %744, %v390_v48  }
 0x17c   :  { %431 = vperm.xlu1 %744, %v391_v52  }
 0x180   :  { %434 = vperm.xlu1 %744, %v392_v56  }
 0x184   :  { %437 = vperm.xlu1 %744, %v393_v59  }
 0x1eb   :  { %v420_v63 = vpop.permute.xlu1 %419  ;;  %v417_v11 = vpop.permute.xlu0 %416 }
 0x1ec   :  { %v442_v13 = vrot.slane %v417_v11, %v441_v8  ;;  %v446_v14 = vrot.slane %v420_v63, %v441_v8 }
 0x1ee   :  { %v472_v18 = vsel %vm471_vm1, %v446_v14, %v442_v13 }
 0x1ef   :  { %v423_v0 = vpop.permute.xlu1 %422 }
 0x1f0   :  { %v450_v15 = vrot.slane %v423_v0, %v441_v8 }
 0x1f2   :  { %v474_v6 = vsel %vm473_vm2, %v450_v15, %v472_v18 }
 0x1f3   :  { %v426_v1 = vpop.permute.xlu1 %425 }
 0x1f4   :  { %v454_v4 = vrot.slane %v426_v1, %v441_v8 }
 0x1f6   :  { %v476_v22 = vsel %vm475_vm3, %v454_v4, %v474_v6 }
 0x1f7   :  { %v429_v3 = vpop.permute.xlu1 %428 }
 0x1f8   :  { %v458_v16 = vrot.slane %v429_v3, %v441_v8 }
 0x1fa   :  { %v478_v10 = vsel %vm477_vm4, %v458_v16, %v476_v22 }
 0x1fb   :  { %v432_v12 = vpop.permute.xlu1 %431 }
 0x1fc   :  { %v462_v19 = vrot.slane %v432_v12, %v441_v8 }
 0x1fe   :  { %v480_v24 = vsel %vm479_vm5, %v462_v19, %v478_v10 }
 0x1ff   :  { %v435_v17 = vpop.permute.xlu1 %434 }
 0x200   :  { %v466_v20 = vrot.slane %v435_v17, %v441_v8 }
 0x202   :  { %v482_v26 = vsel %vm481_vm6, %v466_v20, %v480_v24 }
 0x203   :  { %v438_v51 = vpop.permute.xlu1 %437 }
 0x204   :  { %v470_v25 = vrot.slane %v438_v51, %v441_v8 }
 0x206   :  { %v484_v5 = vsel %vm483_vm7, %v470_v25, %v482_v26 }
 0x207   :  { %681 = vmatmul.mubr.msk.f32.vlgmr.msra.gmra.mrb[0].mxu0 %vm487_vm8, %v484_v5 }
 0x2da   :  { %v560_v33 = vpop.f32.mrb[0].mxu0 }
 0x2db   :  { %v562_v34 = vpop.f32.mrb[1].mxu0  ;;  %v561_v9 = vadd.f32 %v560_v33, %v400_v41 }
 0x2dc   :  { %v563_v35 = vadd.f32 %v562_v34, %v404_v32 }
 0x2de   :  { %v682_v36 = vmul.f32 -1.442695, %v563_v35 }
 0x2e0   :  { %754 = vpow2.f32 %v682_v36 }
 0x2ea   :  { %v755_v37 = vpop.eup %754 }
 0x2eb   :  { %v568_v38 = vadd.f32 1.0, %v755_v37 }
 0x2ed   :  { %756 = vrcp.f32 %v568_v38 }
 0x2f7   :  { %v757_v39 = vpop.eup %756 }
 0x2f8   :  { %v571_v40 = vmul.f32 %v757_v39, %v563_v35 }
 0x2fa   :  { %718 = vmatmul.mubr.msk.f32.vlgmr.msra.gmra.mrb[0].mxu1 %vm583_vm10, %v571_v40 }
 0x3cd   :  { %v653_v43 = vpop.f32.mrb[0].mxu1 }
 0x3ce   :  { %v654_v44 = vadd.f32 %v683_v42, %v653_v43  ;;  %v719_v45 = vpop.f32.mrb[1].mxu1 }
 0x3d0   :  { %v657_v46 = vadd.f32 %v654_v44, %v561_v9 }
 0x3d2   :  { %658 = vst [vmem:[#allocation7] sm:$0xff] %v657_v46 }
 0x3d3   :  { %813 = shalt.err (!%p810_p6)
}
 0x3d4   :  { %s814_s5 = scalar_lea.hbm %s1007_s6, 128 }
 0x3d5   :  { %p815_p7 = scmp.ne.s32.totalorder %s1007_s6, %s814_s5  ;;  %p818_p8 = scmp.lt.u32.totalorder %s814_s5, %s1007_s6 }
 0x3d7   :  { %p820_p9 = pnand %p818_p8, %p815_p7 }
 0x3d9   :  { %823 = shalt.err (!%p820_p9)
}
 0x3da   :  { %668 = dma.vmem_to_hbm [thread:$0]  %s666_s29, 128, %s1007_s6, [#allocation4]  }
 0x3db   :  { %828 = dma.done.wait [#allocation4], 128  }
 0x3dc   :  { %829 = vsyncadd [#allocation4], 4294967168 }
 0x3dd   :  { %672 = vsyncpa [#allocation3], 1 }
 0x3de   :  { %673 = vsyncpa [#allocation6], 1 }
 0x3df   :  { %674 = vsyncpa [#allocation4], 1 }

</bundles_post_ra>
